<compile_context>
chip_gen: v7x
topology: tpu7x:2x2x1
jax: 0.10.0
libtpu: 0.0.40
codegen_flags: <defaults>
</compile_context>

<pallas_src>
import functools

import jax
import jax.numpy as jnp
from jax.experimental import pallas as pl
from jax.experimental.pallas import tpu as pltpu


def _vmem_capacity_bytes() -> int:
    """Physical VMEM per TensorCore; conservative 64 MiB (v7x) fallback."""
    try:
        return int(pltpu.get_tpu_info().vmem_capacity_bytes)
    except Exception:
        return 64 * 1024 * 1024


def _token_avg_pool_kernel(x_ref, o_ref, acc_ref, *, T, BT, SUB, need_mask):
    # x_ref: (BN, BT, BE) input tile, o_ref: (BN, BE) output tile,
    # acc_ref: (BN, SUB, BE) f32 accumulator (persists across the T axis).
    t = pl.program_id(2)
    n_t = pl.num_programs(2)

    @pl.when(t == 0)
    def _init():
        acc_ref[...] = jnp.zeros_like(acc_ref)

    def _accumulate(x):
        # x: (BN, BT, BE) f32.
        if SUB > 1:
            bn, bt, be = x.shape
            # Split the token (sublane) axis; sum over the chunk axis only:
            # pure vreg-wise VPU adds, no cross-sublane reduce in the hot loop.
            x = x.reshape(bn, bt // SUB, SUB, be)
            acc_ref[...] += jnp.sum(x, axis=1)          # (BN, SUB, BE)
        else:
            acc_ref[...] += jnp.sum(x, axis=1, keepdims=True)  # (BN, 1, BE)

    if need_mask:
        # Only the final T step can be ragged; keep interior steps at pure
        # convert+add so the VALU slot never binds ahead of HBM.
        @pl.when(t < n_t - 1)
        def _interior():
            _accumulate(x_ref[...].astype(jnp.float32))

        @pl.when(t == n_t - 1)
        def _ragged():
            x = x_ref[...].astype(jnp.float32)
            row = jax.lax.broadcasted_iota(jnp.int32, (1, BT, 1), 1)
            valid = (row + t * BT) < T
            _accumulate(jnp.where(valid, x, 0.0))
    else:
        _accumulate(x_ref[...].astype(jnp.float32))

    @pl.when(t == n_t - 1)
    def _finalize():
        # Single cross-sublane collapse per (batch, feature) block.
        total = jnp.sum(acc_ref[...], axis=1)           # (BN, BE)
        o_ref[...] = (total * (1.0 / T)).astype(o_ref.dtype)


def token_avg_pool(x: jax.Array, *, block_t: int | None = None) -> jax.Array:
    """x: (N, T, E) -> (N, E), mean over token dim (axis=1)."""
    N, T, E = x.shape
    itemsize = jnp.dtype(x.dtype).itemsize

    # Sublane-packing-aware batch / token blocking.
    if itemsize >= 4:
        bn_target, bt_align = 8, 8
    elif itemsize == 2:
        bn_target, bt_align = 16, 16
    else:
        bn_target, bt_align = 32, 32
    BN = min(bn_target, N)

    # Second "parallel" axis over E so both v7x TensorCores stream when the
    # batch axis alone gives no parallelism.  Only for clean 128-aligned
    # halves (lane-dense, no ragged E stores).  No effect on v5e/v6e (1 TC).
    BE = E
    if N <= BN and E >= 256 and E % 256 == 0:
        BE = E // 2

    # Per-buffer VMEM budget by generation: 128 MiB parts get bigger tiles
    # (amortize per-step overhead), v7x (64 MiB) stays at ~8 MiB/buffer.
    vmem_cap = _vmem_capacity_bytes()
    budget = (16 << 20) if vmem_cap >= (100 << 20) else (8 << 20)

    if block_t is not None:
        BT = min(block_t, T)
        if BT != T and BT % 8 != 0:
            BT = max(8, (BT // 8) * 8)     # keep (8,128) tiling legal
    elif BN * T * BE * itemsize <= budget:
        BT = T                              # whole token axis in one step
    else:
        BT = budget // (BN * BE * itemsize)
        BT = max(bt_align, (BT // bt_align) * bt_align)
        BT = min(BT, T)

    SUB = 8 if BT % 8 == 0 else 1           # sublane-split accumulator?
    need_mask = (T % BT) != 0

    n_b = pl.cdiv(N, BN)
    n_e = pl.cdiv(E, BE)
    n_t = pl.cdiv(T, BT)

    in_tile = BN * BT * BE * itemsize
    out_tile = BN * BE * itemsize
    acc_tile = BN * SUB * BE * 4

    # Triple-buffer the input when compute per step is tiny (many small T
    # steps) so step-boundary DMA issue latency stays hidden.
    n_buf = 3 if (n_t > 2 and in_tile <= (2 << 20)) else 2

    in_index_map = lambda i, e, t: (i, t, e)
    in_spec = pl.BlockSpec((BN, BT, BE), in_index_map)
    if n_buf == 3:
        try:
            in_spec = pl.BlockSpec(
                (BN, BT, BE), in_index_map, pipeline_mode=pl.Buffered(3)
            )
        except Exception:
            n_buf = 2  # older JAX: fall back to default double buffering

    # Right-sized VMEM limit: buffers + headroom, capped below physical
    # capacity so compiler-internal scratch always fits (no 32 MiB floor).
    vmem_request = n_buf * in_tile + 2 * out_tile + acc_tile + (4 << 20)
    vmem_bytes = int(min(vmem_request, vmem_cap - (8 << 20)))

    kernel = functools.partial(
        _token_avg_pool_kernel, T=T, BT=BT, SUB=SUB, need_mask=need_mask
    )

    # TODO(synk): if production E is < 128 or not 128-aligned, pad E in the
    # caller so the output store is lane-dense (not worth an extra HBM pass
    # here for the generic case).
    return pl.pallas_call(
        kernel,
        out_shape=jax.ShapeDtypeStruct((N, E), x.dtype),
        grid_spec=pltpu.PrefetchScalarGridSpec(
            num_scalar_prefetch=0,
            grid=(n_b, n_e, n_t),  # reduction axis (T) last
            in_specs=[in_spec],
            # Same output block across the T axis -> accumulator-resident.
            out_specs=pl.BlockSpec((BN, BE), lambda i, e, t: (i, e)),
            scratch_shapes=[pltpu.VMEM((BN, SUB, BE), jnp.float32)],
        ),
        compiler_params=pltpu.CompilerParams(
            dimension_semantics=("parallel", "parallel", "arbitrary"),
            vmem_limit_bytes=vmem_bytes,
        ),
    )(x)


if __name__ == "__main__":
    key = jax.random.PRNGKey(0)

    # Small shape consistent with the module's forward: (N, T, E).
    N, T, E = 2, 8, 32
    x = jax.random.normal(key, (N, T, E), dtype=jnp.float32)

    out = token_avg_pool(x)
    out = jax.block_until_ready(out)

    ref = jnp.mean(x, axis=1)
    assert out.shape == (N, E), out.shape
    assert jnp.allclose(out, ref, atol=1e-5, rtol=1e-5), "mismatch vs reference"

    # Second check: T-tiling + gated ragged-T mask + ragged batch edge +
    # sublane-split accumulator + triple buffering path.
    k2 = jax.random.PRNGKey(1)
    N2, T2, E2 = 10, 100, 128
    x2 = jax.random.normal(k2, (N2, T2, E2), dtype=jnp.float32)
    out2 = jax.block_until_ready(token_avg_pool(x2, block_t=32))
    ref2 = jnp.mean(x2, axis=1)
    assert out2.shape == (N2, E2), out2.shape
    assert jnp.allclose(out2, ref2, atol=1e-5, rtol=1e-5), "tiled mismatch"

    # Third check: small batch + wide E exercises the dual-TC E-split path.
    k3 = jax.random.PRNGKey(2)
    N3, T3, E3 = 2, 64, 512
    x3 = jax.random.normal(k3, (N3, T3, E3), dtype=jnp.bfloat16)
    out3 = jax.block_until_ready(token_avg_pool(x3))
    ref3 = jnp.mean(x3.astype(jnp.float32), axis=1).astype(jnp.bfloat16)
    assert out3.shape == (N3, E3), out3.shape
    assert jnp.allclose(
        out3.astype(jnp.float32), ref3.astype(jnp.float32), atol=1e-2, rtol=1e-2
    ), "bf16 / E-split mismatch"

    print("KERNEL_OK")
</pallas_src>

<mosaic_0001>
module attributes {stable_mosaic.version = 11 : i64} {
  func.func @_token_avg_pool_kernel(%arg0: i32, %arg1: i32, %arg2: i32, %arg3: memref<2x8x32xf32, #tpu.memory_space<vmem>>, %arg4: memref<2x32xf32, #tpu.memory_space<vmem>>, %arg5: memref<2x8x32xf32, #tpu.memory_space<vmem>>) attributes {dimension_semantics = [#tpu.dimension_semantics<parallel>, #tpu.dimension_semantics<parallel>, #tpu.dimension_semantics<arbitrary>], iteration_bounds = array<i64: 1, 1, 1>, scalar_prefetch = 0 : i64, scratch_operands = 1 : i64, tpu.core_type = #tpu.core_type<tc>, window_params = [{transform_indices = @transform_0, window_bounds = array<i64: 2, 8, 32>}, {transform_indices = @transform_1, window_bounds = array<i64: 2, 32>}]} {
    %c0_i32 = arith.constant 0 : i32
    %0 = arith.cmpi eq, %arg2, %c0_i32 : i32
    %1 = arith.extui %0 : i1 to i32
    %c0_i32_0 = arith.constant 0 : i32
    %2 = arith.cmpi ne, %1, %c0_i32_0 : i32
    scf.if %2 {
      %cst_11 = arith.constant 0.000000e+00 : f32
      %12 = vector.broadcast %cst_11 : f32 to vector<2x8x32xf32>
      %c0_12 = arith.constant 0 : index
      %c0_13 = arith.constant 0 : index
      %c0_14 = arith.constant 0 : index
      %13 = vector.load %arg5[%c0_12, %c0_13, %c0_14] : memref<2x8x32xf32, #tpu.memory_space<vmem>>, vector<2x8x32xf32>
      tpu.vector_store %arg5[%c0_12, %c0_13, %c0_14], %12 {strides = array<i32>} : memref<2x8x32xf32, #tpu.memory_space<vmem>>, vector<2x8x32xf32>,
    } else {
    }
    %c0 = arith.constant 0 : index
    %c0_1 = arith.constant 0 : index
    %c0_2 = arith.constant 0 : index
    %3 = vector.load %arg3[%c0, %c0_1, %c0_2] : memref<2x8x32xf32, #tpu.memory_space<vmem>>, vector<2x8x32xf32>
    %4 = vector.shape_cast %3 : vector<2x8x32xf32> to vector<2x1x8x32xf32>
    %c0_3 = arith.constant 0 : index
    %c0_4 = arith.constant 0 : index
    %c0_5 = arith.constant 0 : index
    %5 = vector.load %arg5[%c0_3, %c0_4, %c0_5] : memref<2x8x32xf32, #tpu.memory_space<vmem>>, vector<2x8x32xf32>
    %cst = arith.constant dense<0.000000e+00> : vector<2x8x32xf32>
    %6 = vector.multi_reduction <add>, %4, %cst [1] : vector<2x1x8x32xf32> to vector<2x8x32xf32>
    %7 = arith.addf %5, %6 : vector<2x8x32xf32>
    %c0_6 = arith.constant 0 : index
    %c0_7 = arith.constant 0 : index
    %c0_8 = arith.constant 0 : index
    %8 = vector.load %arg5[%c0_6, %c0_7, %c0_8] : memref<2x8x32xf32, #tpu.memory_space<vmem>>, vector<2x8x32xf32>
    tpu.vector_store %arg5[%c0_6, %c0_7, %c0_8], %7 {strides = array<i32>} : memref<2x8x32xf32, #tpu.memory_space<vmem>>, vector<2x8x32xf32>,
    %c0_i32_9 = arith.constant 0 : i32
    %9 = arith.cmpi eq, %arg2, %c0_i32_9 : i32
    %10 = arith.extui %9 : i1 to i32
    %c0_i32_10 = arith.constant 0 : i32
    %11 = arith.cmpi ne, %10, %c0_i32_10 : i32
    scf.if %11 {
      %c0_11 = arith.constant 0 : index
      %c0_12 = arith.constant 0 : index
      %c0_13 = arith.constant 0 : index
      %12 = vector.load %arg5[%c0_11, %c0_12, %c0_13] : memref<2x8x32xf32, #tpu.memory_space<vmem>>, vector<2x8x32xf32>
      %cst_14 = arith.constant dense<0.000000e+00> : vector<2x32xf32>
      %13 = vector.multi_reduction <add>, %12, %cst_14 [1] : vector<2x8x32xf32> to vector<2x32xf32>
      %cst_15 = arith.constant 1.250000e-01 : f32
      %14 = vector.broadcast %cst_15 : f32 to vector<2x32xf32>
      %15 = arith.mulf %13, %14 : vector<2x32xf32>
      %c0_16 = arith.constant 0 : index
      %c0_17 = arith.constant 0 : index
      %16 = vector.load %arg4[%c0_16, %c0_17] : memref<2x32xf32, #tpu.memory_space<vmem>>, vector<2x32xf32>
      tpu.vector_store %arg4[%c0_16, %c0_17], %15 {strides = array<i32>} : memref<2x32xf32, #tpu.memory_space<vmem>>, vector<2x32xf32>,
    } else {
    }
    return
  }
  func.func @transform_0(%arg0: i32, %arg1: i32, %arg2: i32) -> (i32, i32, i32) {
    %c0_i32 = arith.constant 0 : i32
    return %arg0, %arg2, %arg1 : i32, i32, i32
  }
  func.func @transform_1(%arg0: i32, %arg1: i32, %arg2: i32) -> (i32, i32) {
    %c0_i32 = arith.constant 0 : i32
    return %arg0, %arg1 : i32, i32
  }
}

</mosaic_0001>

<bundles_post_ra>
// kernel: tpu_custom_call.1
= control target key start
LH: loop header
LB: loop body
LE: loop exit
PB: predicated region body
PF: predicated region fallthrough
CT: control target
= control target key end

     0   :  { %6 = vsyncpa [#allocation4], 0  ;;  %s176_s0 = inlined_call_operand.hbm [shape: f32[2,8,32], index: 0, kind: input, shape index: {}]   ;;  %s177_s1 = inlined_call_operand.hbm [shape: f32[2,32], index: 1, kind: output, shape index: {}]  }
   0x1   :  { %7 = vsyncpa [#allocation5], 0  ;;  %s137_s6 = smov [#allocation3]   ;;  %s89_s10 = scalar_lea.hbm %s176_s0, 256 }
   0x2   :  { %s13_s7 = sshll.u32 %s137_s6, 4  ;;  %p90_p0 = scmp.ne.s32.totalorder %s176_s0, %s89_s10  ;;  %s14_s7 = int_to_ptr.vmem [resolvable:$true] %s13_s7 }
   0x3   :  { %p93_p1 = scmp.lt.u32.totalorder %s89_s10, %s176_s0 }
   0x5   :  { %p95_p2 = pnand %p93_p1, %p90_p0 }
   0x7   :  { %98 = shalt.err (!%p95_p2)
}
   0x8   :  { %s99_s15 = scalar_lea.vmem %s14_s7, 256  ;;  %p104_p4 = scmp.lt.s32.totalorder %s14_s7, %s14_s7 }
   0x9   :  { %p100_p3 = scmp.ne.s32.totalorder %s14_s7, %s99_s15  ;;  %p105_p5 = scmp.lt.s32.totalorder %s99_s15, %s99_s15 }
   0xb   :  { %p106_p6 = por %p105_p5, %p104_p4 }
   0xd   :  { %p107_p7 = pnand %p106_p6, %p100_p3 }
   0xf   :  { %110 = shalt.err (!%p107_p7)
}
  0x10   :  { %s138_s16 = smov 128   ;;  %s139_s17 = smov 8  }
  0x11   :  { %19 = dma.hbm_to_vmem [thread:$0]  %s176_s0, 256, %s14_s7, [#allocation4], %s138_s16, %s138_s16, %s139_s17  }
  0x12   :  { %133 = dma.done.wait [#allocation4], 256  }
  0x13   :  { %134 = vsyncadd [#allocation4], 4294967040  ;;  %vm27_vm0 = vcmask 261120   ;;  %v140_v0 = vmov 0.0   ;;  %v30_v1 = vld [vmem:[#allocation3] sm:$0xff]  ;;  %v31_v2 = vld [vmem:[#allocation3 + $0x8] sm:$0xff] }
  0x14   :  { %28 = vst.msk [vmem:[#allocation2] sm:$0xff] %vm27_vm0, %v140_v0  ;;  %29 = vst.msk [vmem:[#allocation2 + $0x8] sm:$0xff] %vm27_vm0, %v140_v0  ;;  %s141_s0 = smov [#allocation6]   ;;  %vm64_vm1 = vcmask 1041409   ;;  %vm67_vm2 = vcmask 254976  }
  0x15   :  { %s75_s20 = sshll.u32 %s141_s0, 4  ;;  %s76_s20 = int_to_ptr.vmem [resolvable:$true] %s75_s20 }
  0x16   :  { %s111_s21 = scalar_lea.vmem %s76_s20, 32  ;;  %p116_p9 = scmp.lt.s32.totalorder %s76_s20, %s76_s20 }
  0x17   :  { %p112_p8 = scmp.ne.s32.totalorder %s76_s20, %s111_s21  ;;  %p117_p10 = scmp.lt.s32.totalorder %s111_s21, %s111_s21 }
  0x19   :  { %p118_p11 = por %p117_p10, %p116_p9 }
  0x1b   :  { %v32_v3 = vld [vmem:[#allocation2] sm:$0xff]  ;;  %v33_v4 = vld [vmem:[#allocation2 + $0x8] sm:$0xff]  ;;  %p119_p12 = pnand %p118_p11, %p112_p8 }
  0x1c   :  { %v36_v5 = vadd.f32 %v32_v3, %v30_v1  ;;  %v37_v6 = vadd.f32 %v33_v4, %v31_v2 }
  0x1e   :  { %39 = vst.msk [vmem:[#allocation2] sm:$0xff] %vm27_vm0, %v36_v5  ;;  %40 = vst.msk [vmem:[#allocation2 + $0x8] sm:$0xff] %vm27_vm0, %v37_v6 }
  0x25   :  { %v44_v7 = vld [vmem:[#allocation2] sm:$0xff]  ;;  %v45_v8 = vld [vmem:[#allocation2 + $0x8] sm:$0xff] }
  0x26   :  { %v46_v9 = vsel %vm27_vm0, %v44_v7, 0.0  ;;  %v53_v10 = vsel %vm27_vm0, %v45_v8, 0.0 }
  0x27   :  { %v47_v11 = vrot.slane %v46_v9, 4  ;;  %v54_v12 = vrot.slane %v53_v10, 4 }
  0x29   :  { %v48_v13 = vadd.f32 %v47_v11, %v46_v9  ;;  %v55_v14 = vadd.f32 %v54_v12, %v53_v10 }
  0x2b   :  { %v49_v15 = vrot.slane %v48_v13, 2  ;;  %v56_v16 = vrot.slane %v55_v14, 2 }
  0x2d   :  { %v50_v17 = vadd.f32 %v49_v15, %v48_v13  ;;  %v57_v18 = vadd.f32 %v56_v16, %v55_v14 }
  0x2f   :  { %v51_v19 = vrot.slane %v50_v17, 1  ;;  %v58_v20 = vrot.slane %v57_v18, 1 }
  0x31   :  { %v52_v21 = vadd.f32 %v51_v19, %v50_v17  ;;  %v59_v22 = vadd.f32 %v58_v20, %v57_v18 }
  0x33   :  { %v60_v23 = vmul.f32 0.125, %v52_v21  ;;  %v61_v24 = vmul.f32 0.125, %v59_v22 }
  0x35   :  { %v65_v25 = vsel %vm64_vm1, %v61_v24, %v60_v23 }
  0x36   :  { %68 = vst.msk [vmem:[#allocation6] sm:$0x3] %vm67_vm2, %v65_v25 }
  0x37   :  { %122 = shalt.err (!%p119_p12)
}
  0x38   :  { %s123_s24 = scalar_lea.hbm %s177_s1, 32 }
  0x39   :  { %p124_p13 = scmp.ne.s32.totalorder %s177_s1, %s123_s24  ;;  %p127_p0 = scmp.lt.u32.totalorder %s123_s24, %s177_s1 }
  0x3b   :  { %p129_p1 = pnand %p127_p0, %p124_p13 }
  0x3d   :  { %132 = shalt.err (!%p129_p1)
}
  0x3e   :  { %78 = dma.vmem_to_hbm [thread:$0]  %s76_s20, 32, %s177_s1, [#allocation5]  }
  0x3f   :  { %135 = dma.done.wait [#allocation5], 32  }
  0x40   :  { %136 = vsyncadd [#allocation5], 4294967264 }
  0x41   :  { %82 = vsyncpa [#allocation4], 1 }
  0x42   :  { %83 = vsyncpa [#allocation5], 1 }

</bundles_post_ra>
